<compile_context>
chip_gen: v7x
topology: tpu7x:2x2x1
jax: 0.10.0
libtpu: 0.0.40
codegen_flags: <defaults>
</compile_context>

<pallas_src>
import jax
import jax.numpy as jnp
from jax.experimental import pallas as pl
from jax.experimental.pallas import tpu as pltpu


def stacked_gru_kernel(x_ref, h0_ref, wih_ref, whh_ref, b_ref, h1_ref, inp_ref):
    """One grid step == one GRU layer.

    x_ref:   (B, IN)     bf16 original input (padded to IN cols; used at layer 0)
    h0_ref:  (B, H)      f32 this layer's initial hidden
    wih_ref: (3, IN, H)  bf16 per-gate W_ih^T (gate order r, z, n); rows >= I_l zero
    whh_ref: (3, H, H)   bf16 per-gate W_hh^T
    b_ref:   (4, H)      f32 biases: [b_r(=b_ih_r+b_hh_r), b_z(=..), b_ih_n, b_hh_n]
    h1_ref:  (B, H)      f32 this layer's new hidden (output)
    inp_ref: (B, IN)     bf16 VMEM scratch: input carried from previous layer
    """
    H = h0_ref.shape[-1]

    # Layer 0: seed the carried input with x.
    @pl.when(pl.program_id(0) == 0)
    def _():
        inp_ref[...] = x_ref[...]

    x = inp_ref[...]                      # (B, IN) bf16 — matmul operand
    h = h0_ref[...]                       # (B, H)  f32  — used in final blend
    h_b = h.astype(jnp.bfloat16)          # bf16 matmul operand

    def dot(a, w):
        return jnp.dot(a, w, preferred_element_type=jnp.float32)

    b_r = b_ref[0:1, :]
    b_z = b_ref[1:2, :]
    b_in = b_ref[2:3, :]
    b_hn = b_ref[3:4, :]

    # PyTorch GRUCell gate order: r, z, n.  Per-gate lane-dense matmuls.
    r = jax.nn.sigmoid(dot(x, wih_ref[0]) + dot(h_b, whh_ref[0]) + b_r)
    z = jax.nn.sigmoid(dot(x, wih_ref[1]) + dot(h_b, whh_ref[1]) + b_z)
    n = jnp.tanh(dot(x, wih_ref[2]) + b_in + r * (dot(h_b, whh_ref[2]) + b_hn))
    h_new = (1.0 - z) * n + z * h                              # (B, H) f32

    h1_ref[...] = h_new.astype(h1_ref.dtype)

    # Carry to next layer (inter-layer dropout is eval-mode identity).
    # Partial store: leftover columns [H:IN] only ever multiply zero weight rows.
    inp_ref[:, :H] = h_new.astype(inp_ref.dtype)


def prepare_params(params, hidden_size):
    """Pre-transpose, pad, gate-split and stack GRUCell weights ONCE (off hot path).

    params: list of (w_ih (3H, I_l), w_hh (3H, H), b_ih (3H,), b_hh (3H,)) in
    PyTorch layout (gate order r, z, n along dim 0).

    Returns:
      wih (L, 3, IN, H) bf16, whh (L, 3, H, H) bf16, b (L, 4, H) f32
      where b rows are [b_ih_r + b_hh_r, b_ih_z + b_hh_z, b_ih_n, b_hh_n].
    """
    H = hidden_size
    in_sizes = [w_ih.shape[1] for (w_ih, _, _, _) in params]
    IN = max(in_sizes + [H])
    wih_s, whh_s, b_s = [], [], []
    for (w_ih, w_hh, b_ih, b_hh) in params:
        wi_gates, wh_gates = [], []
        for g in range(3):
            wi = jnp.transpose(w_ih[g * H:(g + 1) * H, :])        # (I_l, H)
            if wi.shape[0] < IN:
                wi = jnp.pad(wi, ((0, IN - wi.shape[0]), (0, 0)))  # zero rows
            wi_gates.append(wi)
            wh_gates.append(jnp.transpose(w_hh[g * H:(g + 1) * H, :]))  # (H, H)
        wih_s.append(jnp.stack(wi_gates).astype(jnp.bfloat16))     # (3, IN, H)
        whh_s.append(jnp.stack(wh_gates).astype(jnp.bfloat16))     # (3, H, H)
        b_s.append(jnp.stack([
            b_ih[0:H] + b_hh[0:H],          # r
            b_ih[H:2 * H] + b_hh[H:2 * H],  # z
            b_ih[2 * H:3 * H],              # i_n
            b_hh[2 * H:3 * H],              # h_n
        ]).astype(jnp.float32))                                    # (4, H)
    return jnp.stack(wih_s), jnp.stack(whh_s), jnp.stack(b_s)


def stacked_gru(x, h0, stacked_params, dropout=0.0):
    """Fused StackedGRU forward. stacked_params come from prepare_params()."""
    del dropout  # eval-mode identity between layers
    wih, whh, b = stacked_params
    L, _, IN, H = wih.shape
    B = x.shape[0]
    if x.shape[1] < IN:
        x = jnp.pad(x, ((0, 0), (0, IN - x.shape[1])))
    x = x.astype(jnp.bfloat16)

    # Explicit VMEM budget: double-buffered bf16 weights + activations + scratch.
    weight_bytes = (3 * IN * H + 3 * H * H) * 2                 # bf16, one layer
    per_step = (2 * weight_bytes            # weight double buffers
                + 2 * 4 * H * 4             # biases (db)
                + 4 * B * H * 4             # h0 + h1 blocks (db)
                + 2 * B * IN * 2            # x (db)
                + B * IN * 2)               # carry scratch
    vmem_limit = int(min(max(4 * per_step, 8 * 1024 * 1024), 100 * 1024 * 1024))

    h1 = pl.pallas_call(
        stacked_gru_kernel,
        out_shape=jax.ShapeDtypeStruct((L, B, H), jnp.float32),
        grid_spec=pltpu.PrefetchScalarGridSpec(
            num_scalar_prefetch=0,
            grid=(L,),
            in_specs=[
                pl.BlockSpec((B, IN), lambda l: (0, 0)),                  # x
                pl.BlockSpec((None, B, H), lambda l: (l, 0, 0)),          # h0[l]
                pl.BlockSpec((None, 3, IN, H), lambda l: (l, 0, 0, 0)),   # W_ih^T[l]
                pl.BlockSpec((None, 3, H, H), lambda l: (l, 0, 0, 0)),    # W_hh^T[l]
                pl.BlockSpec((None, 4, H), lambda l: (l, 0, 0)),          # biases[l]
            ],
            out_specs=pl.BlockSpec((None, B, H), lambda l: (l, 0, 0)),    # h1[l]
            scratch_shapes=[pltpu.VMEM((B, IN), jnp.bfloat16)],
        ),
        compiler_params=pltpu.CompilerParams(
            dimension_semantics=("arbitrary",),   # layers are inherently sequential
            vmem_limit_bytes=vmem_limit,
        ),
    )(x, h0.astype(jnp.float32), wih, whh, b)

    # No dropout is applied after the last layer, so output == last layer hidden.
    return h1[-1], h1


def stacked_gru_ref(x, h0, params, quantize=False):
    """Pure-JAX reference (torch.nn.GRUCell math), eval-mode dropout.

    quantize=True mirrors the kernel's bf16 weight/activation streaming
    (f32 accumulation and gate math) for a tight numerical check.
    """
    H = h0.shape[-1]
    inp = x
    h1 = []
    for i, (w_ih, w_hh, b_ih, b_hh) in enumerate(params):
        if quantize:
            wi = w_ih.astype(jnp.bfloat16)
            wh = w_hh.astype(jnp.bfloat16)
            gi = jnp.dot(inp.astype(jnp.bfloat16), wi.T,
                         preferred_element_type=jnp.float32) + b_ih
            gh = jnp.dot(h0[i].astype(jnp.bfloat16), wh.T,
                         preferred_element_type=jnp.float32) + b_hh
        else:
            gi = inp @ w_ih.T + b_ih
            gh = h0[i] @ w_hh.T + b_hh
        i_r, i_z, i_n = gi[:, :H], gi[:, H:2 * H], gi[:, 2 * H:]
        h_r, h_z, h_n = gh[:, :H], gh[:, H:2 * H], gh[:, 2 * H:]
        r = jax.nn.sigmoid(i_r + h_r)
        z = jax.nn.sigmoid(i_z + h_z)
        n = jnp.tanh(i_n + r * h_n)
        h_i = (1.0 - z) * n + z * h0[i]
        inp = h_i
        h1.append(h_i)
    return inp, jnp.stack(h1, axis=0)


def init_params(key, num_layers, input_size, hidden_size):
    """Deterministic GRUCell parameter init (uniform(-1/sqrt(H), 1/sqrt(H)))."""
    params = []
    bound = 1.0 / float(hidden_size) ** 0.5
    isz = input_size
    for _ in range(num_layers):
        key, k1, k2, k3, k4 = jax.random.split(key, 5)
        w_ih = jax.random.uniform(k1, (3 * hidden_size, isz), jnp.float32, -bound, bound)
        w_hh = jax.random.uniform(k2, (3 * hidden_size, hidden_size), jnp.float32, -bound, bound)
        b_ih = jax.random.uniform(k3, (3 * hidden_size,), jnp.float32, -bound, bound)
        b_hh = jax.random.uniform(k4, (3 * hidden_size,), jnp.float32, -bound, bound)
        params.append((w_ih, w_hh, b_ih, b_hh))
        isz = hidden_size
    return params


if __name__ == "__main__":
    num_layers = 3
    input_size = 96       # != hidden_size: exercises the zero-padded layer-0 path
    hidden_size = 128     # lane-aligned (multiple of 128)
    batch = 8             # sublane-aligned
    dropout = 0.0

    key = jax.random.PRNGKey(0)
    key, kx, kh, kp = jax.random.split(key, 4)
    x = jax.random.normal(kx, (batch, input_size), jnp.float32)
    h0 = jax.random.normal(kh, (num_layers, batch, hidden_size), jnp.float32)
    params = init_params(kp, num_layers, input_size, hidden_size)

    # One-time parameter preparation (transpose / pad / gate-split / bf16) — off hot path.
    stacked_params = prepare_params(params, hidden_size)

    out, h1 = stacked_gru(x, h0, stacked_params, dropout)
    out = jax.block_until_ready(out)
    h1 = jax.block_until_ready(h1)

    assert out.shape == (batch, hidden_size)
    assert h1.shape == (num_layers, batch, hidden_size)

    # Tight check vs a reference that mirrors the bf16 weight streaming.
    out_q, h1_q = stacked_gru_ref(x, h0, params, quantize=True)
    assert jnp.allclose(out, out_q, atol=2e-3, rtol=2e-3), \
        f"max err {jnp.max(jnp.abs(out - out_q))}"
    assert jnp.allclose(h1, h1_q, atol=2e-3, rtol=2e-3), \
        f"max err {jnp.max(jnp.abs(h1 - h1_q))}"

    # Loose check vs the exact f32 PyTorch-semantics reference (bf16 weight quant).
    out_ref, h1_ref = stacked_gru_ref(x, h0, params, quantize=False)
    assert jnp.allclose(out, out_ref, atol=5e-2, rtol=5e-2), \
        f"max err {jnp.max(jnp.abs(out - out_ref))}"
    assert jnp.allclose(h1, h1_ref, atol=5e-2, rtol=5e-2), \
        f"max err {jnp.max(jnp.abs(h1 - h1_ref))}"

    print("KERNEL_OK")
</pallas_src>

<mosaic_0001>
module attributes {stable_mosaic.version = 11 : i64} {
  func.func @stacked_gru_kernel(%arg0: i32, %arg1: memref<8x128xbf16, #tpu.memory_space<vmem>>, %arg2: memref<1x8x128xf32, #tpu.memory_space<vmem>>, %arg3: memref<1x3x128x128xbf16, #tpu.memory_space<vmem>>, %arg4: memref<1x3x128x128xbf16, #tpu.memory_space<vmem>>, %arg5: memref<1x4x128xf32, #tpu.memory_space<vmem>>, %arg6: memref<1x8x128xf32, #tpu.memory_space<vmem>>, %arg7: memref<8x128xbf16, #tpu.memory_space<vmem>>) attributes {dimension_semantics = [#tpu.dimension_semantics<arbitrary>], iteration_bounds = array<i64: 3>, scalar_prefetch = 0 : i64, scratch_operands = 1 : i64, tpu.core_type = #tpu.core_type<tc>, window_params = [{pipeline_mode = #tpu.pipeline_mode<synchronous>, transform_indices = @transform_0, window_bounds = array<i64: 8, 128>}, {transform_indices = @transform_1, window_bounds = array<i64: 1, 8, 128>}, {transform_indices = @transform_2, window_bounds = array<i64: 1, 3, 128, 128>}, {transform_indices = @transform_3, window_bounds = array<i64: 1, 3, 128, 128>}, {transform_indices = @transform_4, window_bounds = array<i64: 1, 4, 128>}, {transform_indices = @transform_5, window_bounds = array<i64: 1, 8, 128>}]} {
    %c0_i32 = arith.constant 0 : i32
    %0 = arith.cmpi eq, %arg0, %c0_i32 : i32
    %1 = arith.extui %0 : i1 to i32
    %c0_i32_0 = arith.constant 0 : i32
    %2 = arith.cmpi ne, %1, %c0_i32_0 : i32
    scf.if %2 {
      %c0_51 = arith.constant 0 : index
      %c0_52 = arith.constant 0 : index
      %66 = vector.load %arg1[%c0_51, %c0_52] : memref<8x128xbf16, #tpu.memory_space<vmem>>, vector<8x128xbf16>
      %c0_53 = arith.constant 0 : index
      %c0_54 = arith.constant 0 : index
      %67 = vector.load %arg7[%c0_53, %c0_54] : memref<8x128xbf16, #tpu.memory_space<vmem>>, vector<8x128xbf16>
      tpu.vector_store %arg7[%c0_53, %c0_54], %66 {strides = array<i32>} : memref<8x128xbf16, #tpu.memory_space<vmem>>, vector<8x128xbf16>,
    } else {
    }
    %c0 = arith.constant 0 : index
    %c0_1 = arith.constant 0 : index
    %3 = vector.load %arg7[%c0, %c0_1] : memref<8x128xbf16, #tpu.memory_space<vmem>>, vector<8x128xbf16>
    %c0_2 = arith.constant 0 : index
    %c0_3 = arith.constant 0 : index
    %c0_4 = arith.constant 0 : index
    %4 = vector.load %arg2[%c0_2, %c0_3, %c0_4] : memref<1x8x128xf32, #tpu.memory_space<vmem>>, vector<1x8x128xf32>
    %5 = vector.shape_cast %4 : vector<1x8x128xf32> to vector<8x128xf32>
    %6 = arith.truncf %5 : vector<8x128xf32> to vector<8x128xbf16>
    %c0_5 = arith.constant 0 : index
    %c0_6 = arith.constant 0 : index
    %c0_7 = arith.constant 0 : index
    %7 = vector.load %arg5[%c0_5, %c0_6, %c0_7] : memref<1x4x128xf32, #tpu.memory_space<vmem>>, vector<1x1x128xf32>
    %8 = vector.shape_cast %7 : vector<1x1x128xf32> to vector<1x128xf32>
    %c0_8 = arith.constant 0 : index
    %c1 = arith.constant 1 : index
    %c0_9 = arith.constant 0 : index
    %9 = vector.load %arg5[%c0_8, %c1, %c0_9] : memref<1x4x128xf32, #tpu.memory_space<vmem>>, vector<1x1x128xf32>
    %10 = vector.shape_cast %9 : vector<1x1x128xf32> to vector<1x128xf32>
    %c0_10 = arith.constant 0 : index
    %c2 = arith.constant 2 : index
    %c0_11 = arith.constant 0 : index
    %11 = vector.load %arg5[%c0_10, %c2, %c0_11] : memref<1x4x128xf32, #tpu.memory_space<vmem>>, vector<1x1x128xf32>
    %12 = vector.shape_cast %11 : vector<1x1x128xf32> to vector<1x128xf32>
    %c0_12 = arith.constant 0 : index
    %c3 = arith.constant 3 : index
    %c0_13 = arith.constant 0 : index
    %13 = vector.load %arg5[%c0_12, %c3, %c0_13] : memref<1x4x128xf32, #tpu.memory_space<vmem>>, vector<1x1x128xf32>
    %14 = vector.shape_cast %13 : vector<1x1x128xf32> to vector<1x128xf32>
    %c0_14 = arith.constant 0 : index
    %c0_15 = arith.constant 0 : index
    %c0_16 = arith.constant 0 : index
    %c0_17 = arith.constant 0 : index
    %15 = vector.load %arg3[%c0_14, %c0_15, %c0_16, %c0_17] : memref<1x3x128x128xbf16, #tpu.memory_space<vmem>>, vector<1x1x128x128xbf16>
    %16 = vector.shape_cast %15 : vector<1x1x128x128xbf16> to vector<128x128xbf16>
    %cst = arith.constant dense<0.000000e+00> : vector<8x128xf32>
    %17 = tpu.matmul %3, %16, %cst {dimension_numbers = #tpu.dot_dimension_numbers<[1], [0], [0], [1], [0, 0, 1, 1], [], []>} : vector<8x128xbf16>, vector<128x128xbf16>, vector<8x128xf32> -> vector<8x128xf32>
    %c0_18 = arith.constant 0 : index
    %c0_19 = arith.constant 0 : index
    %c0_20 = arith.constant 0 : index
    %c0_21 = arith.constant 0 : index
    %18 = vector.load %arg4[%c0_18, %c0_19, %c0_20, %c0_21] : memref<1x3x128x128xbf16, #tpu.memory_space<vmem>>, vector<1x1x128x128xbf16>
    %19 = vector.shape_cast %18 : vector<1x1x128x128xbf16> to vector<128x128xbf16>
    %cst_22 = arith.constant dense<0.000000e+00> : vector<8x128xf32>
    %20 = tpu.matmul %6, %19, %cst_22 {dimension_numbers = #tpu.dot_dimension_numbers<[1], [0], [0], [1], [0, 0, 1, 1], [], []>} : vector<8x128xbf16>, vector<128x128xbf16>, vector<8x128xf32> -> vector<8x128xf32>
    %21 = arith.addf %17, %20 : vector<8x128xf32>
    %22 = vector.broadcast %8 : vector<1x128xf32> to vector<8x128xf32>
    %23 = arith.addf %21, %22 : vector<8x128xf32>
    %24 = arith.negf %23 : vector<8x128xf32>
    %25 = math.exp %24 : vector<8x128xf32>
    %cst_23 = arith.constant 1.000000e+00 : f32
    %26 = vector.broadcast %cst_23 : f32 to vector<8x128xf32>
    %27 = arith.addf %26, %25 : vector<8x128xf32>
    %28 = arith.divf %26, %27 : vector<8x128xf32>
    %c0_24 = arith.constant 0 : index
    %c1_25 = arith.constant 1 : index
    %c0_26 = arith.constant 0 : index
    %c0_27 = arith.constant 0 : index
    %29 = vector.load %arg3[%c0_24, %c1_25, %c0_26, %c0_27] : memref<1x3x128x128xbf16, #tpu.memory_space<vmem>>, vector<1x1x128x128xbf16>
    %30 = vector.shape_cast %29 : vector<1x1x128x128xbf16> to vector<128x128xbf16>
    %cst_28 = arith.constant dense<0.000000e+00> : vector<8x128xf32>
    %31 = tpu.matmul %3, %30, %cst_28 {dimension_numbers = #tpu.dot_dimension_numbers<[1], [0], [0], [1], [0, 0, 1, 1], [], []>} : vector<8x128xbf16>, vector<128x128xbf16>, vector<8x128xf32> -> vector<8x128xf32>
    %c0_29 = arith.constant 0 : index
    %c1_30 = arith.constant 1 : index
    %c0_31 = arith.constant 0 : index
    %c0_32 = arith.constant 0 : index
    %32 = vector.load %arg4[%c0_29, %c1_30, %c0_31, %c0_32] : memref<1x3x128x128xbf16, #tpu.memory_space<vmem>>, vector<1x1x128x128xbf16>
    %33 = vector.shape_cast %32 : vector<1x1x128x128xbf16> to vector<128x128xbf16>
    %cst_33 = arith.constant dense<0.000000e+00> : vector<8x128xf32>
    %34 = tpu.matmul %6, %33, %cst_33 {dimension_numbers = #tpu.dot_dimension_numbers<[1], [0], [0], [1], [0, 0, 1, 1], [], []>} : vector<8x128xbf16>, vector<128x128xbf16>, vector<8x128xf32> -> vector<8x128xf32>
    %35 = arith.addf %31, %34 : vector<8x128xf32>
    %36 = vector.broadcast %10 : vector<1x128xf32> to vector<8x128xf32>
    %37 = arith.addf %35, %36 : vector<8x128xf32>
    %38 = arith.negf %37 : vector<8x128xf32>
    %39 = math.exp %38 : vector<8x128xf32>
    %cst_34 = arith.constant 1.000000e+00 : f32
    %40 = vector.broadcast %cst_34 : f32 to vector<8x128xf32>
    %41 = arith.addf %40, %39 : vector<8x128xf32>
    %42 = arith.divf %40, %41 : vector<8x128xf32>
    %c0_35 = arith.constant 0 : index
    %c2_36 = arith.constant 2 : index
    %c0_37 = arith.constant 0 : index
    %c0_38 = arith.constant 0 : index
    %43 = vector.load %arg3[%c0_35, %c2_36, %c0_37, %c0_38] : memref<1x3x128x128xbf16, #tpu.memory_space<vmem>>, vector<1x1x128x128xbf16>
    %44 = vector.shape_cast %43 : vector<1x1x128x128xbf16> to vector<128x128xbf16>
    %cst_39 = arith.constant dense<0.000000e+00> : vector<8x128xf32>
    %45 = tpu.matmul %3, %44, %cst_39 {dimension_numbers = #tpu.dot_dimension_numbers<[1], [0], [0], [1], [0, 0, 1, 1], [], []>} : vector<8x128xbf16>, vector<128x128xbf16>, vector<8x128xf32> -> vector<8x128xf32>
    %46 = vector.broadcast %12 : vector<1x128xf32> to vector<8x128xf32>
    %47 = arith.addf %45, %46 : vector<8x128xf32>
    %c0_40 = arith.constant 0 : index
    %c2_41 = arith.constant 2 : index
    %c0_42 = arith.constant 0 : index
    %c0_43 = arith.constant 0 : index
    %48 = vector.load %arg4[%c0_40, %c2_41, %c0_42, %c0_43] : memref<1x3x128x128xbf16, #tpu.memory_space<vmem>>, vector<1x1x128x128xbf16>
    %49 = vector.shape_cast %48 : vector<1x1x128x128xbf16> to vector<128x128xbf16>
    %cst_44 = arith.constant dense<0.000000e+00> : vector<8x128xf32>
    %50 = tpu.matmul %6, %49, %cst_44 {dimension_numbers = #tpu.dot_dimension_numbers<[1], [0], [0], [1], [0, 0, 1, 1], [], []>} : vector<8x128xbf16>, vector<128x128xbf16>, vector<8x128xf32> -> vector<8x128xf32>
    %51 = vector.broadcast %14 : vector<1x128xf32> to vector<8x128xf32>
    %52 = arith.addf %50, %51 : vector<8x128xf32>
    %53 = arith.mulf %28, %52 : vector<8x128xf32>
    %54 = arith.addf %47, %53 : vector<8x128xf32>
    %55 = math.tanh %54 : vector<8x128xf32>
    %cst_45 = arith.constant 1.000000e+00 : f32
    %56 = vector.broadcast %cst_45 : f32 to vector<8x128xf32>
    %57 = arith.subf %56, %42 : vector<8x128xf32>
    %58 = arith.mulf %57, %55 : vector<8x128xf32>
    %59 = arith.mulf %42, %5 : vector<8x128xf32>
    %60 = arith.addf %58, %59 : vector<8x128xf32>
    %c0_46 = arith.constant 0 : index
    %c0_47 = arith.constant 0 : index
    %c0_48 = arith.constant 0 : index
    %61 = vector.load %arg6[%c0_46, %c0_47, %c0_48] : memref<1x8x128xf32, #tpu.memory_space<vmem>>, vector<1x8x128xf32>
    %62 = vector.shape_cast %61 : vector<1x8x128xf32> to vector<8x128xf32>
    %63 = vector.shape_cast %60 : vector<8x128xf32> to vector<1x8x128xf32>
    tpu.vector_store %arg6[%c0_46, %c0_47, %c0_48], %63 {strides = array<i32>} : memref<1x8x128xf32, #tpu.memory_space<vmem>>, vector<1x8x128xf32>,
    %64 = arith.truncf %60 : vector<8x128xf32> to vector<8x128xbf16>
    %c0_49 = arith.constant 0 : index
    %c0_50 = arith.constant 0 : index
    %65 = vector.load %arg7[%c0_49, %c0_50] : memref<8x128xbf16, #tpu.memory_space<vmem>>, vector<8x128xbf16>
    tpu.vector_store %arg7[%c0_49, %c0_50], %64 {strides = array<i32>} : memref<8x128xbf16, #tpu.memory_space<vmem>>, vector<8x128xbf16>,
    return
  }
  func.func @transform_0(%arg0: i32) -> (i32, i32) {
    %c0_i32 = arith.constant 0 : i32
    %c0_i32_0 = arith.constant 0 : i32
    %c0_i32_1 = arith.constant 0 : i32
    return %c0_i32, %c0_i32_0 : i32, i32
  }
  func.func @transform_1(%arg0: i32) -> (i32, i32, i32) {
    %c0_i32 = arith.constant 0 : i32
    %c0_i32_0 = arith.constant 0 : i32
    %c0_i32_1 = arith.constant 0 : i32
    return %arg0, %c0_i32, %c0_i32_0 : i32, i32, i32
  }
  func.func @transform_2(%arg0: i32) -> (i32, i32, i32, i32) {
    %c0_i32 = arith.constant 0 : i32
    %c0_i32_0 = arith.constant 0 : i32
    %c0_i32_1 = arith.constant 0 : i32
    %c0_i32_2 = arith.constant 0 : i32
    return %arg0, %c0_i32, %c0_i32_0, %c0_i32_1 : i32, i32, i32, i32
  }
  func.func @transform_3(%arg0: i32) -> (i32, i32, i32, i32) {
    %c0_i32 = arith.constant 0 : i32
    %c0_i32_0 = arith.constant 0 : i32
    %c0_i32_1 = arith.constant 0 : i32
    %c0_i32_2 = arith.constant 0 : i32
    return %arg0, %c0_i32, %c0_i32_0, %c0_i32_1 : i32, i32, i32, i32
  }
  func.func @transform_4(%arg0: i32) -> (i32, i32, i32) {
    %c0_i32 = arith.constant 0 : i32
    %c0_i32_0 = arith.constant 0 : i32
    %c0_i32_1 = arith.constant 0 : i32
    return %arg0, %c0_i32, %c0_i32_0 : i32, i32, i32
  }
  func.func @transform_5(%arg0: i32) -> (i32, i32, i32) {
    %c0_i32 = arith.constant 0 : i32
    %c0_i32_0 = arith.constant 0 : i32
    %c0_i32_1 = arith.constant 0 : i32
    return %arg0, %c0_i32, %c0_i32_0 : i32, i32, i32
  }
}

</mosaic_0001>

<bundles_post_ra>
// kernel: tpu_custom_call.1
= control target key start
LH: loop header
LB: loop body
LE: loop exit
PB: predicated region body
PF: predicated region fallthrough
CT: control target
= control target key end

     0   :  { %s2294_s0 = inlined_call_operand.hbm [shape: bf16[8,128], index: 0, kind: input, shape index: {}]   ;;  %s2295_s1 = inlined_call_operand.hbm [shape: f32[3,8,128], index: 1, kind: input, shape index: {}]   ;;  %s2296_s2 = inlined_call_operand.hbm [shape: bf16[3,3,128,128], index: 2, kind: input, shape index: {}]   ;;  %s2297_s3 = inlined_call_operand.hbm [shape: bf16[3,3,128,128], index: 3, kind: input, shape index: {}]   ;;  %s2298_s4 = inlined_call_operand.vmem [shape: f32[3,4,128], index: 4, kind: input, shape index: {}]   ;;  %s2299_s5 = inlined_call_operand.hbm [shape: f32[3,8,128], index: 5, kind: output, shape index: {}]  }
   0x1   :  { %2315 = sst [smem:[#allocation20_spill]] %s2295_s1 }
   0x2   :  { %2316 = sst [smem:[#allocation21_spill]] %s2296_s2 }
   0x3   :  { %10 = vsyncpa [#allocation4], 0 }
   0x4   :  { %11 = vsyncpa [#allocation7], 0 }
   0x5   :  { %13 = vsyncpa [#allocation7 + $0x1], 0 }
   0x6   :  { %14 = vsyncpa [#allocation10], 0 }
   0x7   :  { %16 = vsyncpa [#allocation10 + $0x1], 0 }
   0x8   :  { %17 = vsyncpa [#allocation5], 0 }
   0x9   :  { %19 = vsyncpa [#allocation5 + $0x1], 0  ;;  %s1857_s18 = smov 0   ;;  %s1859_s19 = smov 0  }
   0xa   :  { %s1861_s20 = smov 0   ;;  %s1863_s21 = smov 0  }
   0xb LB: > { %2317 = sst [smem:[#allocation16_spill]] %s1812_s20  ;;  %s1878_s22 = sadd.s32 1, %s1816_s21   ;;  %s1816_s21 = sphi %s1863_s21, %s2344_s21   ;;  %s1812_s20 = sphi %s1861_s20, %s2346_s20   ;;  %s1808_s19 = sphi %s1859_s19, %s2348_s19   ;;  %s1804_s18 = sphi %s1857_s18, %s2347_s18  }
   0xc   : > { %2318 = sst [smem:[#allocation17_spill]] %s1878_s22  ;;  %s53_s23 = sadd.s32 1, %s1812_s20 }
   0xd   : > { %s50_s24 = ssub.s32 %s1816_s21, %s1878_s22  ;;  %p2300_p0 = scmp.ne.s32.totalorder %s1812_s20, %s1808_s19 }
   0xe   : > { %p51_p1 = scmp.eq.s32.totalorder %s50_s24, 0  ;;  %p61_p2 = scmp.eq.s32.totalorder %s1816_s21, 0 }
   0xf   : > { %p1526_p3 = scmp.lt.s32.totalorder %s1816_s21, 3  ;;  %s205_s26 = sand.u32 1, %s1816_s21  }
  0x10   : > { %s1888_s25 = scalar_select %p51_p1, %s1812_s20, %s53_s23  }
  0x11   : > { %p62_p4 = por %p61_p2, %p2300_p0  ;;  %s1895_s27 = sand.u32 1, %s1812_s20  }
  0x12   : > { %2319 = sst [smem:[#allocation18_spill]] %s1888_s25  ;;  %s1184_s28 = sshll.u32 %s1895_s27, 3 }
  0x13   : > { %s1185_s29 = sshll.u32 %s1816_s21, 7  ;;  %s2320_s1 = sld [smem:[#allocation20_spill]] }
  0x14   : > { %s209_s8 = scalar_lea.vmem [#allocation6], %s1184_s28  ;;  %p1904_p5 = pnand %p1526_p3, %p62_p4 }
  0x15   : > { %s216_s9 = sshll.u32 %s209_s8, 4  ;;  %s2301_s11 = smul.u32 192, %s1895_s27  ;;  %s1908_s9 = int_to_ptr.vmem [resolvable:$true] %s216_s9 }
  0x16   : > { %s2321_s10 = scalar_select %p1904_p5, 1, 0 }
  0x17   : > { %s1911_s12 = scalar_lea.sflag [#allocation7], %s205_s26  ;;  %p1917_p7 = pneg %p1904_p5 }
  0x19   : > { %s1902_s7 = scalar_lea.hbm %s2320_s1, %s1185_s29  ;;  %s1629_s17 = scalar_lea.hbm %s2320_s1, 384 }
  0x1a   : > { %s1624_s13 = scalar_lea.hbm %s1902_s7, 128  ;;  %p1630_p10 = scmp.lt.u32.totalorder %s1902_s7, %s2320_s1 }
  0x1b   : > { %p1625_p6 = scmp.ne.s32.totalorder %s1902_s7, %s1624_s13  ;;  %p1631_p11 = scmp.lt.u32.totalorder %s1629_s17, %s1624_s13 }
  0x1c   : > { %s2322_s14 = scalar_select %p1917_p7, 1, 0 }
  0x1d   : > { %p1627_p8 = pnand %p1917_p7, %p1625_p6  ;;  %p1632_p12 = por %p1631_p11, %p1630_p10 }
  0x1e   : > { %p1633_p13 = scmp.lt.u32.totalorder %s1624_s13, %s1902_s7 }
  0x1f   : > { %p1628_p9 = pneg %p1627_p8 }
  0x20   : > { %p1634_p1 = por %p1633_p13, %p1632_p12 }
  0x22   : > { %p1635_p2 = pnand %p1634_p1, %p1628_p9 }
  0x24   : > { %1638 = shalt.err (!%p1635_p2)
}
  0x25   : > { %s1639_s26 = scalar_lea.vmem %s1908_s9, 128  ;;  %s1818_s28 = smov [#allocation6]  }
  0x26   : > { %p1640_p3 = scmp.ne.s32.totalorder %s1908_s9, %s1639_s26  ;;  %s1644_s29 = sshll.u32 %s1818_s28, 4  ;;  %s1645_s29 = int_to_ptr.vmem [resolvable:$false] %s1644_s29 }
  0x27   : > { %s1646_s30 = scalar_lea.vmem %s1645_s29, 256  ;;  %p1647_p8 = scmp.lt.s32.totalorder %s1908_s9, %s1645_s29 }
  0x28   : > { %p1642_p4 = pnand %p1640_p3, %p1917_p7  ;;  %p1648_p0 = scmp.lt.s32.totalorder %s1646_s30, %s1639_s26 }
  0x2a   : > { %p1643_p6 = pneg %p1642_p4  ;;  %p1649_p10 = por %p1648_p0, %p1647_p8 }
  0x2c   : > { %p1650_p11 = pnand %p1649_p10, %p1643_p6 }
  0x2e   : > { %1653 = shalt.err (!%p1650_p11)
}
  0x2f   : > { %1514 = dma.hbm_to_vmem [thread:$0]  (!%p1904_p5), %s1902_s7, 128, %s1908_s9, %s1911_s12  }
  0x30   : > { %s227_s6 = scalar_lea.vmem [#allocation8], %s2301_s11  ;;  %s1944_s13 = sadd.s32 4294967295, %s1816_s21  }
  0x31   : > { %s234_s8 = sshll.u32 %s227_s6, 4  ;;  %s1180_s15 = sadd.s32 4294967294, %s1816_s21   ;;  %s1946_s8 = int_to_ptr.vmem [resolvable:$true] %s234_s8 }
  0x32   : > { %p66_p0 = scmp.ne.s32.totalorder %s1808_s19, %s1804_s18  ;;  %p2304_p9 = scmp.eq.s32.totalorder %s1944_s13, 0 }
  0x33   : > { %p168_p12 = scmp.eq.s32.totalorder %s1944_s13, 2  ;;  %p174_p13 = scmp.eq.s32.totalorder %s1180_s15, 2 }
  0x34   : > { %p1955_p1 = por %p2304_p9, %p66_p0  ;;  %p1181_p2 = scmp.ge.s32.totalorder %s1816_s21, 1 }
  0x35   : > { %p2324_p3 = scmp.ne.s32.totalorder %s1812_s20, %s1808_s19  ;;  %p1967_p6 = por %p174_p13, %p66_p0 }
  0x36   : > { %s2323_s7 = scalar_select %p1955_p1, 1, 0 }
  0x37   : > { %p1963_p4 = por %p168_p12, %p2324_p3  ;;  %p181_p8 = scmp.lt.s32.totalorder %s1816_s21, 4 }
  0x38   : > { %s2326_s16 = scalar_select %p1967_p6, 1, 0 }
  0x39   : > { %s2325_s9 = scalar_select %p1963_p4, 1, 0 }
  0x3a   : > { %2327 = sst [smem:[#allocation19_spill]] %s2326_s16  ;;  %s2302_s17 = smul.u32 3072, %s1816_s21 }
  0x3b   : > { %p1974_p11 = pnand %p1181_p2, %p181_p8  ;;  %s1819_s24 = smov [#allocation3]  }
  0x3c   : > { %s194_s26 = sshll.u32 %s1819_s24, 4  ;;  %s2329_s2 = sld [smem:[#allocation21_spill]]  ;;  %s1978_s26 = int_to_ptr.vmem [resolvable:$true] %s194_s26 }
  0x3d   : > { %s2328_s23 = scalar_select %p1974_p11, 1, 0 }
  0x3e   : > { %p1507_p0 = pneg %p1974_p11 }
  0x40   : > { %p1991_p12 = pnand %p1507_p0, %p2304_p9 }
  0x42   : > { %s1985_s30 = scalar_lea.hbm %s2329_s2, %s2302_s17  ;;  %s1659_s29 = scalar_lea.hbm %s2329_s2, 9216 }
  0x43   : > { %s2330_s6 = scalar_select %p1991_p12, 1, 0 }
  0x44   : > { %s1654_s15 = scalar_lea.hbm %s1985_s30, 3072  ;;  %p1660_p8 = scmp.lt.u32.totalorder %s1985_s30, %s2329_s2 }
  0x45   : > { %p1655_p13 = scmp.ne.s32.totalorder %s1985_s30, %s1654_s15  ;;  %p1661_p10 = scmp.lt.u32.totalorder %s1659_s29, %s1654_s15 }
  0x46   : > { %p1663_p4 = scmp.lt.u32.totalorder %s1654_s15, %s1985_s30 }
  0x47   : > { %p1657_p2 = pnand %p1655_p13, %p1917_p7  ;;  %p1662_p6 = por %p1661_p10, %p1660_p8 }
  0x49   : > { %p1658_p3 = pneg %p1657_p2  ;;  %p1664_p0 = por %p1663_p4, %p1662_p6 }
  0x4b   : > { %p1665_p9 = pnand %p1664_p0, %p1658_p3 }
  0x4d   : > { %1668 = shalt.err (!%p1665_p9)
}
  0x4e   : > { %s1669_s1 = scalar_lea.vmem %s1946_s8, 3072  ;;  %s1820_s24 = smov [#allocation8]  }
  0x4f   : > { %p1670_p13 = scmp.ne.s32.totalorder %s1946_s8, %s1669_s1  ;;  %s1674_s28 = sshll.u32 %s1820_s24, 4  ;;  %s1675_s28 = int_to_ptr.vmem [resolvable:$false] %s1674_s28 }
  0x50   : > { %s1676_s11 = scalar_lea.vmem %s1675_s28, 6144  ;;  %p1677_p11 = scmp.lt.s32.totalorder %s1946_s8, %s1675_s28 }
  0x51   : > { %p1672_p2 = pnand %p1670_p13, %p1917_p7  ;;  %p1678_p12 = scmp.lt.s32.totalorder %s1676_s11, %s1669_s1 }
  0x53   : > { %p1673_p1 = pneg %p1672_p2  ;;  %p1679_p10 = por %p1678_p12, %p1677_p11 }
  0x55   : > { %p1680_p8 = pnand %p1679_p10, %p1673_p1 }
  0x57   : > { %1683 = shalt.err (!%p1680_p8)
}
  0x58   : > { %s1821_s17 = smov 64   ;;  %s1822_s15 = smov 4  }
  0x59   : > { %1517 = dma.hbm_to_vmem [thread:$0]  (!%p1904_p5), %s1985_s30, 3072, %s1946_s8, %s1911_s12, %s1821_s17, %s1821_s17, %s1822_s15  }
  0x5a   : > { %s2331_s29 = smul.u32 3072, %s1816_s21  ;;  %s1684_s25 = scalar_lea.hbm %s2294_s0, 64 }
  0x5b   : > { %p1685_p9 = scmp.ne.s32.totalorder %s2294_s0, %s1684_s25  ;;  %p2332_p1 = scmp.ne.s32.totalorder %s2330_s6, 0 }
  0x5c   : > { %s2025_s1 = scalar_lea.hbm %s2297_s3, %s2331_s29  ;;  %p1691_p12 = scmp.lt.u32.totalorder %s1684_s25, %s2294_s0 }
  0x5d   : > { %p1686_p4 = pneg %p2332_p1 }
  0x5f   : > { %p1687_p6 = pnand %p1686_p4, %p1685_p9 }
  0x61   : > { %p1688_p11 = pneg %p1687_p6 }
  0x63   : > { %p1693_p3 = pnand %p1691_p12, %p1688_p11 }
  0x65   : > { %1696 = shalt.err (!%p1693_p3)
}
  0x66   : > { %s1697_s8 = scalar_lea.vmem %s1978_s26, 64  ;;  %p1705_p10 = scmp.lt.s32.totalorder %s1978_s26, %s1978_s26 }
  0x67   : > { %p1698_p0 = scmp.ne.s32.totalorder %s1978_s26, %s1697_s8  ;;  %p1706_p8 = scmp.lt.s32.totalorder %s1697_s8, %s1697_s8 }
  0x69   : > { %p1700_p13 = pnand %p1698_p0, %p1686_p4  ;;  %p1707_p5 = por %p1706_p8, %p1705_p10 }
  0x6b   : > { %p1701_p2 = pneg %p1700_p13 }
  0x6d   : > { %p1708_p7 = pnand %p1707_p5, %p1701_p2 }
  0x6f   : > { %1711 = shalt.err (!%p1708_p7)
}
  0x70   : > { %1510 = dma.hbm_to_vmem [thread:$0]  (!%p2332_p1), %s2294_s0, 64, %s1978_s26, [#allocation4]  }
  0x71   : > { %s2333_s22 = smul.u32 192, %s1895_s27  ;;  %s245_s30 = scalar_lea.sflag [#allocation10], %s1895_s27 }
  0x72   : > { %s1712_s29 = scalar_lea.hbm %s2025_s1, 3072  ;;  %p2334_p7 = scmp.ne.s32.totalorder %s2322_s14, 0 }
  0x73   : > { %s248_s25 = scalar_lea.vmem [#allocation9], %s2333_s22  ;;  %p1713_p5 = scmp.ne.s32.totalorder %s2025_s1, %s1712_s29 }
  0x74   : > { %s255_s16 = sshll.u32 %s248_s25, 4  ;;  %s1717_s28 = scalar_lea.hbm %s2297_s3, 9216  ;;  %s2050_s16 = int_to_ptr.vmem [resolvable:$true] %s255_s16 }
  0x75   : > { %p1715_p9 = pnand %p1713_p5, %p2334_p7  ;;  %p1718_p6 = scmp.lt.u32.totalorder %s2025_s1, %s2297_s3 }
  0x76   : > { %p1719_p1 = scmp.lt.u32.totalorder %s1717_s28, %s1712_s29  ;;  %p1721_p12 = scmp.lt.u32.totalorder %s1712_s29, %s2025_s1 }
  0x77   : > { %p1716_p4 = pneg %p1715_p9 }
  0x78   : > { %p1720_p11 = por %p1719_p1, %p1718_p6 }
  0x7a   : > { %p1722_p3 = por %p1721_p12, %p1720_p11 }
  0x7c   : > { %p1723_p0 = pnand %p1722_p3, %p1716_p4 }
  0x7e   : > { %1726 = shalt.err (!%p1723_p0)
}
  0x7f   : > { %s1727_s26 = scalar_lea.vmem %s2050_s16, 3072  ;;  %s1823_s8 = smov [#allocation9]  }
  0x80   : > { %p1728_p13 = scmp.ne.s32.totalorder %s2050_s16, %s1727_s26  ;;  %s1732_s2 = sshll.u32 %s1823_s8, 4  ;;  %s1733_s2 = int_to_ptr.vmem [resolvable:$false] %s1732_s2 }
  0x81   : > { %s1734_s20 = scalar_lea.vmem %s1733_s2, 6144  ;;  %p1735_p8 = scmp.lt.s32.totalorder %s2050_s16, %s1733_s2 }
  0x82   : > { %p1730_p2 = pnand %p1728_p13, %p2334_p7  ;;  %p1736_p5 = scmp.lt.s32.totalorder %s1734_s20, %s1727_s26 }
  0x84   : > { %p1731_p10 = pneg %p1730_p2  ;;  %p1737_p9 = por %p1736_p5, %p1735_p8 }
  0x86   : > { %p1738_p6 = pnand %p1737_p9, %p1731_p10 }
  0x88   : > { %1741 = shalt.err (!%p1738_p6)
}
  0x89   : > { %p2335_p4 = scmp.ne.s32.totalorder %s2321_s10, 0  ;;  %p2336_p7 = scmp.ne.s32.totalorder %s2328_s23, 0 }
  0x8a   : > { %p2337_p1 = scmp.eq.s32.totalorder (!%p2336_p7), %s1944_s13, 0 }
  0x8b   : > { %1520 = dma.hbm_to_vmem [thread:$0]  (!%p2335_p4), %s2025_s1, 3072, %s2050_s16, %s245_s30, %s1821_s17, %s1821_s17, %s1822_s15  }
  0x8c   : > { %274 = sbr.rel (%p2336_p7) target bundleno = 512 (0x200), region = 40 }
  0x93   : > { %1787 = dma.done.wait (%p2337_p1), [#allocation4], 64   ;;  %p2338_p11 = pmov %p2337_p1 }
  0x94   : > { %s280_s10 = sand.u32 1, %s1944_s13   ;;  %s2087_s14 = sand.u32 1, %s1808_s19  }
  0x95   : > { %1789 = vsyncadd (%p2338_p11), [#allocation4], 4294967232  ;;  %s1190_s27 = sshll.u32 %s2087_s14, 3  ;;  %s281_s22 = scalar_lea.sflag [#allocation7], %s280_s10 }
  0x96   : > { %s2090_s25 = scalar_lea.vmem [#allocation6], %s1190_s27  ;;  %p2339_p12 = scmp.ne.s32.totalorder %s2323_s7, 0 }
  0x98   : > { %1791 = dma.done.wait (%p2339_p12), %s281_s22, 3200  }
  0x99   : > { %1793 = vsyncadd (%p2339_p12), %s281_s22, 4294964096  ;;  %s1494_s23 = smul.u32 192, %s2087_s14  ;;  %s299_s15 = scalar_lea.sflag [#allocation10], %s2087_s14 }
  0x9b   : > { %s2097_s17 = scalar_lea.vmem [#allocation8], %s1494_s23  ;;  %s2100_s1 = scalar_lea.vmem [#allocation9], %s1494_s23 }
  0x9c   : > { %1795 = dma.done.wait (%p2339_p12), %s299_s15, 3072  }
  0x9d   : > { %1797 = vsyncadd (%p2339_p12), %s299_s15, 4294964224  ;;  %p343_p3 = scmp.lt.s32.totalorder %s1944_s13, 2  ;;  %s2113_s28 = scalar_lea.vmem [#allocation11], %s1190_s27 }
  0x9e   : > { %p2340_p0 = scmp.ne.s32.totalorder %s1944_s13, 0 }
  0x9f   : > { %s344_s16 = scalar_select %p343_p3, %s1944_s13, 2 }
  0xa0   : > { %351 = sbr.rel (%p2340_p0) target bundleno = 167 (0xa7), region = 60  ;;  %v352_v0 = vld [vmem:[#allocation3] sm:$0xf] (!%p2340_p0) }
  0xa1   : > { %s1192_s30 = sshll.u32 %s344_s16, 2  ;;  %353 = vst [vmem:[#allocation2] sm:$0xf] (!%p2340_p0), %v352_v0 }
  0xa2   : > { %s2111_s24 = scalar_lea.vmem %s2298_s4, %s1192_s30 }
  0xa7 PF: > { %v1566_v1 = vld [vmem:[%s2100_s1] sm:$0xff]   ;;  %v1824_v2 = vmov 0.0   ;;  %v1568_v4 = vld [vmem:[%s2100_s1 + $0x8] sm:$0xff]   ;;  %vm1825_vm0 = vmmov 0   ;;  %v1570_v6 = vld [vmem:[%s2100_s1 + $0x10] sm:$0xff]   ;;  %s1313_s7 = sshll.u32 %s1944_s13, 7 }
  0xa8   : > { %1370 = vmatprep.subr.bf16.mxu0 %v1824_v2  ;;  %1390 = vmatprep.subr.bf16.mxu1 %v1824_v2  ;;  %v1567_v3 = vld [vmem:[%s2097_s17] sm:$0xff]   ;;  %v1569_v5 = vld [vmem:[%s2097_s17 + $0x8] sm:$0xff]   ;;  %v1571_v7 = vld [vmem:[%s2097_s17 + $0x10] sm:$0xff]   ;;  %s1043_s11 = sshll.u32 %s2113_s28, 4  ;;  %s2250_s8 = scalar_lea.hbm %s2299_s5, %s1313_s7  ;;  %s2252_s11 = int_to_ptr.vmem [resolvable:$true] %s1043_s11 }
  0xa9   : > { %1371 = vmatpush3.bf16.msra.mxu0 %v1566_v1  ;;  %1386 = vmatprep.mubr.msk.bf16.mxu0 %vm1825_vm0, %v1824_v2  ;;  %v1572_v8 = vld [vmem:[%s2100_s1 + $0x18] sm:$0xff]   ;;  %v1574_v10 = vld [vmem:[%s2100_s1 + $0x20] sm:$0xff]   ;;  %v1576_v12 = vld [vmem:[%s2100_s1 + $0x28] sm:$0xff]   ;;  %s1030_s2 = scalar_lea.sflag [#allocation5], %s2087_s14  ;;  %s1742_s20 = scalar_lea.vmem %s2252_s11, 128 }
  0xaa   : > { %1391 = vmatpush3.bf16.msra.mxu1 %v1567_v3  ;;  %1372 = vmatprep.subr.bf16.mxu0 %v1824_v2  ;;  %v1573_v9 = vld [vmem:[%s2097_s17 + $0x18] sm:$0xff]   ;;  %v1575_v11 = vld [vmem:[%s2097_s17 + $0x20] sm:$0xff]   ;;  %v1577_v13 = vld [vmem:[%s2097_s17 + $0x28] sm:$0xff]   ;;  %p1743_p13 = scmp.ne.s32.totalorder %s2252_s11, %s1742_s20  ;;  %p2341_p2 = scmp.ne.s32.totalorder %s2325_s9, 0 }
  0xab   : > { %1392 = vmatprep.subr.bf16.mxu1 %v1824_v2  ;;  %1406 = vmatprep.mubr.msk.bf16.mxu1 %vm1825_vm0, %v1824_v2  ;;  %v1578_v14 = vld [vmem:[%s2100_s1 + $0x30] sm:$0xff]   ;;  %v1580_v16 = vld [vmem:[%s2100_s1 + $0x38] sm:$0xff]   ;;  %v2160_v20 = vld [vmem:[#allocation2] sm:$0xf]  ;;  %s1826_s13 = smov [#allocation11]  }
  0xac   : > { %v1579_v15 = vld [vmem:[%s2097_s17 + $0x30] sm:$0xff]   ;;  %v1581_v18 = vld [vmem:[%s2097_s17 + $0x38] sm:$0xff]   ;;  %v1582_v21 = vld [vmem:[%s2100_s1 + $0x40] sm:$0xff]   ;;  %p1744_p10 = pnand %p1743_p13, %p2341_p2  ;;  %s1746_s10 = sshll.u32 %s1826_s13, 4  ;;  %s1747_s10 = int_to_ptr.vmem [resolvable:$false] %s1746_s10 }
  0xad   : > { %1373 = vmatpush3.bf16.msra.mxu0 %v1568_v4  ;;  %v2151_v17 = vld [vmem:[%s2090_s25] sm:$0xff]  ;;  %v1583_v22 = vld [vmem:[%s2097_s17 + $0x40] sm:$0xff]   ;;  %v1584_v23 = vld [vmem:[%s2100_s1 + $0x48] sm:$0xff]   ;;  %s1748_s27 = scalar_lea.vmem %s1747_s10, 256  ;;  %p1749_p5 = scmp.lt.s32.totalorder %s2252_s11, %s1747_s10 }
  0xae   : > { %1393 = vmatpush3.bf16.msra.mxu1 %v1569_v5  ;;  %1374 = vmatprep.subr.bf16.mxu0 %v1824_v2  ;;  %v2158_v19 = vpack.c.bf16 %v2151_v17, %v2151_v17  ;;  %v1585_v24 = vld [vmem:[%s2097_s17 + $0x48] sm:$0xff]   ;;  %v1586_v25 = vld [vmem:[%s2100_s1 + $0x50] sm:$0xff]   ;;  %v1588_v27 = vld [vmem:[%s2100_s1 + $0x58] sm:$0xff]   ;;  %p1745_p8 = pneg %p1744_p10  ;;  %p1750_p9 = scmp.lt.s32.totalorder %s1748_s27, %s1742_s20 }
  0xaf   : > { %1394 = vmatprep.subr.bf16.mxu1 %v1824_v2  ;;  %v1587_v26 = vld [vmem:[%s2097_s17 + $0x50] sm:$0xff]   ;;  %v1589_v28 = vld [vmem:[%s2097_s17 + $0x58] sm:$0xff]   ;;  %v1590_v29 = vld [vmem:[%s2100_s1 + $0x60] sm:$0xff]  }
  0xb0   : > { %v1591_v30 = vld [vmem:[%s2097_s17 + $0x60] sm:$0xff]   ;;  %v1592_v31 = vld [vmem:[%s2100_s1 + $0x68] sm:$0xff]   ;;  %v1594_v33 = vld [vmem:[%s2100_s1 + $0x70] sm:$0xff]   ;;  %p1751_p6 = por %p1750_p9, %p1749_p5 }
  0xb1   : > { %1375 = vmatpush3.bf16.msra.mxu0 %v1570_v6  ;;  %v1593_v32 = vld [vmem:[%s2097_s17 + $0x68] sm:$0xff]   ;;  %v1595_v34 = vld [vmem:[%s2097_s17 + $0x70] sm:$0xff]   ;;  %v1596_v35 = vld [vmem:[%s2100_s1 + $0x78] sm:$0xff]  }
  0xb2   : > { %1395 = vmatpush3.bf16.msra.mxu1 %v1571_v7  ;;  %1376 = vmatprep.subr.bf16.mxu0 %v1824_v2  ;;  %v1597_v36 = vld [vmem:[%s2097_s17 + $0x78] sm:$0xff]   ;;  %v1598_v37 = vld [vmem:[%s2097_s17 + $0x80] sm:$0xff]   ;;  %v1600_v39 = vld [vmem:[%s2097_s17 + $0x88] sm:$0xff]   ;;  %p1752_p4 = pnand %p1751_p6, %p1745_p8 }
  0xb3   : > { %1396 = vmatprep.subr.bf16.mxu1 %v1824_v2  ;;  %v1599_v38 = vld [vmem:[%s2100_s1 + $0x80] sm:$0xff]   ;;  %v1601_v40 = vld [vmem:[%s2100_s1 + $0x88] sm:$0xff]   ;;  %v1602_v41 = vld [vmem:[%s2097_s17 + $0x90] sm:$0xff]  }
  0xb4   : > { %v1603_v42 = vld [vmem:[%s2100_s1 + $0x90] sm:$0xff]   ;;  %v1604_v43 = vld [vmem:[%s2097_s17 + $0x98] sm:$0xff]   ;;  %v1606_v45 = vld [vmem:[%s2097_s17 + $0xa0] sm:$0xff]  }
  0xb5   : > { %1377 = vmatpush3.bf16.msra.mxu0 %v1572_v8  ;;  %v1605_v44 = vld [vmem:[%s2100_s1 + $0x98] sm:$0xff]   ;;  %v1607_v46 = vld [vmem:[%s2100_s1 + $0xa0] sm:$0xff]   ;;  %v1608_v47 = vld [vmem:[%s2097_s17 + $0xa8] sm:$0xff]  }
  0xb6   : > { %1397 = vmatpush3.bf16.msra.mxu1 %v1573_v9  ;;  %1378 = vmatprep.subr.bf16.mxu0 %v1824_v2  ;;  %v1609_v48 = vld [vmem:[%s2100_s1 + $0xa8] sm:$0xff]   ;;  %v1610_v49 = vld [vmem:[%s2097_s17 + $0xb0] sm:$0xff]   ;;  %v1612_v51 = vld [vmem:[%s2097_s17 + $0xb8] sm:$0xff]  }
  0xb7   : > { %1398 = vmatprep.subr.bf16.mxu1 %v1824_v2  ;;  %v1611_v50 = vld [vmem:[%s2100_s1 + $0xb0] sm:$0xff]   ;;  %v1613_v52 = vld [vmem:[%s2100_s1 + $0xb8] sm:$0xff]  }
  0xb8   : > { %v1210_v62 = vld [vmem:[%s2111_s24] ss:$0 sm:$0xff] }
  0xb9   : > { %1379 = vmatpush3.bf16.msra.mxu0 %v1574_v10  ;;  %v1260_v10 = vld [vmem:[%s2111_s24 + $0x1] ss:$0 sm:$0xff] }
  0xba   : > { %1399 = vmatpush3.bf16.msra.mxu1 %v1575_v11  ;;  %1380 = vmatprep.subr.bf16.mxu0 %v1824_v2 }
  0xbb   : > { %1400 = vmatprep.subr.bf16.mxu1 %v1824_v2 }
  0xbd   : > { %1381 = vmatpush3.bf16.msra.mxu0 %v1576_v12 }
  0xbe   : > { %1401 = vmatpush3.bf16.msra.mxu1 %v1577_v13  ;;  %1382 = vmatprep.subr.bf16.mxu0 %v1824_v2 }
  0xbf   : > { %1402 = vmatprep.subr.bf16.mxu1 %v1824_v2 }
  0xc1   : > { %1383 = vmatpush3.bf16.msra.mxu0 %v1578_v14 }
  0xc2   : > { %1403 = vmatpush3.bf16.msra.mxu1 %v1579_v15  ;;  %1384 = vmatprep.subr.bf16.mxu0 %v1824_v2 }
  0xc3   : > { %1404 = vmatprep.subr.bf16.mxu1 %v1824_v2 }
  0xc5   : > { %1385 = vmatpush3.bf16.msra.mxu0 %v1580_v16  ;;  %v1278_v16 = vld [vmem:[%s2111_s24 + $0x2] ss:$0 sm:$0xff] }
  0xc6   : > { %1405 = vmatpush3.bf16.msra.mxu1 %v1581_v18  ;;  %1410 = vmatprep.subr.bf16.mxu0 %v1824_v2  ;;  %v1303_v18 = vld [vmem:[%s2111_s24 + $0x3] ss:$0 sm:$0xff] }
  0xc7   : > { %1430 = vmatprep.subr.bf16.mxu1 %v1824_v2 }
  0xc8   : > { %1387 = vmatmul.mubr.bf16.vlgmr.msra.gmra.mrb[0].mxu0 %v2158_v19 }
  0xc9   : > { %1407 = vmatmul.mubr.bf16.vlgmr.msra.gmra.mrb[0].mxu1 %v2160_v20  ;;  %1411 = vmatpush3.bf16.msra.mxu0 %v1582_v21 }
  0xca   : > { %1431 = vmatpush3.bf16.msra.mxu1 %v1583_v22  ;;  %1412 = vmatprep.subr.bf16.mxu0 %v1824_v2 }
  0xcb   : > { %1432 = vmatprep.subr.bf16.mxu1 %v1824_v2  ;;  %1426 = vmatprep.mubr.msk.bf16.mxu0 %vm1825_vm0, %v1824_v2 }
  0xcc   : > { %1446 = vmatprep.mubr.msk.bf16.mxu1 %vm1825_vm0, %v1824_v2 }
  0xcd   : > { %1413 = vmatpush3.bf16.msra.mxu0 %v1584_v23 }
  0xce   : > { %1433 = vmatpush3.bf16.msra.mxu1 %v1585_v24  ;;  %1414 = vmatprep.subr.bf16.mxu0 %v1824_v2 }
  0xcf   : > { %1434 = vmatprep.subr.bf16.mxu1 %v1824_v2 }
  0xd1   : > { %1415 = vmatpush3.bf16.msra.mxu0 %v1586_v25 }
  0xd2   : > { %1435 = vmatpush3.bf16.msra.mxu1 %v1587_v26  ;;  %1416 = vmatprep.subr.bf16.mxu0 %v1824_v2 }
  0xd3   : > { %1436 = vmatprep.subr.bf16.mxu1 %v1824_v2 }
  0xd5   : > { %1417 = vmatpush3.bf16.msra.mxu0 %v1588_v27 }
  0xd6   : > { %1437 = vmatpush3.bf16.msra.mxu1 %v1589_v28  ;;  %1418 = vmatprep.subr.bf16.mxu0 %v1824_v2 }
  0xd7   : > { %1438 = vmatprep.subr.bf16.mxu1 %v1824_v2 }
  0xd9   : > { %1419 = vmatpush3.bf16.msra.mxu0 %v1590_v29 }
  0xda   : > { %1439 = vmatpush3.bf16.msra.mxu1 %v1591_v30  ;;  %1420 = vmatprep.subr.bf16.mxu0 %v1824_v2 }
  0xdb   : > { %1440 = vmatprep.subr.bf16.mxu1 %v1824_v2 }
  0xdd   : > { %1421 = vmatpush3.bf16.msra.mxu0 %v1592_v31 }
  0xde   : > { %1441 = vmatpush3.bf16.msra.mxu1 %v1593_v32  ;;  %1422 = vmatprep.subr.bf16.mxu0 %v1824_v2 }
  0xdf   : > { %1442 = vmatprep.subr.bf16.mxu1 %v1824_v2 }
  0xe1   : > { %1423 = vmatpush3.bf16.msra.mxu0 %v1594_v33 }
  0xe2   : > { %1443 = vmatpush3.bf16.msra.mxu1 %v1595_v34  ;;  %1424 = vmatprep.subr.bf16.mxu0 %v1824_v2 }
  0xe3   : > { %1444 = vmatprep.subr.bf16.mxu1 %v1824_v2 }
  0xe5   : > { %1425 = vmatpush3.bf16.msra.mxu0 %v1596_v35 }
  0xe6   : > { %1445 = vmatpush3.bf16.msra.mxu1 %v1597_v36  ;;  %1450 = vmatprep.subr.bf16.mxu0 %v1824_v2 }
  0xe7   : > { %1470 = vmatprep.subr.bf16.mxu1 %v1824_v2 }
  0xe8   : > { %1427 = vmatmul.mubr.bf16.vlgmr.msra.gmra.mrb[4].mxu0 %v2158_v19 }
  0xe9   : > { %1447 = vmatmul.mubr.bf16.vlgmr.msra.gmra.mrb[4].mxu1 %v2160_v20  ;;  %1451 = vmatpush3.bf16.msra.mxu0 %v1598_v37 }
  0xea   : > { %1471 = vmatpush3.bf16.msra.mxu1 %v1599_v38  ;;  %1452 = vmatprep.subr.bf16.mxu0 %v1824_v2 }
  0xeb   : > { %1472 = vmatprep.subr.bf16.mxu1 %v1824_v2  ;;  %1466 = vmatprep.mubr.msk.bf16.mxu0 %vm1825_vm0, %v1824_v2 }
  0xec   : > { %1486 = vmatprep.mubr.msk.bf16.mxu1 %vm1825_vm0, %v1824_v2 }
  0xed   : > { %1453 = vmatpush3.bf16.msra.mxu0 %v1600_v39 }
  0xee   : > { %1473 = vmatpush3.bf16.msra.mxu1 %v1601_v40  ;;  %1454 = vmatprep.subr.bf16.mxu0 %v1824_v2 }
  0xef   : > { %1474 = vmatprep.subr.bf16.mxu1 %v1824_v2 }
  0xf1   : > { %1455 = vmatpush3.bf16.msra.mxu0 %v1602_v41 }
  0xf2   : > { %1475 = vmatpush3.bf16.msra.mxu1 %v1603_v42  ;;  %1456 = vmatprep.subr.bf16.mxu0 %v1824_v2 }
  0xf3   : > { %1476 = vmatprep.subr.bf16.mxu1 %v1824_v2 }
  0xf5   : > { %1457 = vmatpush3.bf16.msra.mxu0 %v1604_v43 }
  0xf6   : > { %1477 = vmatpush3.bf16.msra.mxu1 %v1605_v44  ;;  %1458 = vmatprep.subr.bf16.mxu0 %v1824_v2 }
  0xf7   : > { %1478 = vmatprep.subr.bf16.mxu1 %v1824_v2 }
  0xf9   : > { %1459 = vmatpush3.bf16.msra.mxu0 %v1606_v45 }
  0xfa   : > { %1479 = vmatpush3.bf16.msra.mxu1 %v1607_v46  ;;  %1460 = vmatprep.subr.bf16.mxu0 %v1824_v2 }
  0xfb   : > { %1480 = vmatprep.subr.bf16.mxu1 %v1824_v2 }
  0xfd   : > { %1461 = vmatpush3.bf16.msra.mxu0 %v1608_v47 }
  0xfe   : > { %1481 = vmatpush3.bf16.msra.mxu1 %v1609_v48  ;;  %1462 = vmatprep.subr.bf16.mxu0 %v1824_v2 }
  0xff   : > { %1482 = vmatprep.subr.bf16.mxu1 %v1824_v2 }
 0x101   : > { %1463 = vmatpush3.bf16.msra.mxu0 %v1610_v49 }
 0x102   : > { %1483 = vmatpush3.bf16.msra.mxu1 %v1611_v50  ;;  %1464 = vmatprep.subr.bf16.mxu0 %v1824_v2 }
 0x103   : > { %1484 = vmatprep.subr.bf16.mxu1 %v1824_v2 }
 0x105   : > { %1465 = vmatpush3.bf16.msra.mxu0 %v1612_v51 }
 0x106   : > { %1485 = vmatpush3.bf16.msra.mxu1 %v1613_v52 }
 0x108   : > { %1467 = vmatmul.mubr.bf16.vlgmr.msra.gmra.mrb[8].mxu0 %v2160_v20 }
 0x109   : > { %1487 = vmatmul.mubr.bf16.vlgmr.msra.gmra.mrb[8].mxu1 %v2158_v19 }
 0x19b   : > { %v475_v53 = vpop.f32.mrb[0].mxu0 }
 0x19c   : > { %v563_v54 = vpop.f32.mrb[0].mxu1  ;;  %v1388_v55 = vpop.f32.mrb[1].mxu0 }
 0x19d   : > { %v564_v56 = vadd.f32 %v563_v54, %v475_v53  ;;  %v1408_v57 = vpop.f32.mrb[1].mxu1  ;;  %v478_v58 = vpop.f32.mrb[2].mxu0 }
 0x19e   : > { %v566_v59 = vpop.f32.mrb[2].mxu1  ;;  %v1389_v60 = vpop.f32.mrb[3].mxu0 }
 0x19f   : > { %v1409_v61 = vpop.f32.mrb[3].mxu1  ;;  %v573_v63 = vadd.f32 %v1210_v62, %v564_v56 }
 0x1a1   : > { %v1211_v8 = vmul.f32 -1.442695, %v573_v63 }
 0x1a3   : > { %1614 = vpow2.f32 %v1211_v8 }
 0x1ad   : > { %v1615_v13 = vpop.eup %1614 }
 0x1ae   : > { %v577_v14 = vadd.f32 1.0, %v1615_v13 }
 0x1bb   : > { %v696_v0 = vpop.f32.mrb[4].mxu0 }
 0x1bc   : > { %v784_v1 = vpop.f32.mrb[4].mxu1  ;;  %v1428_v2 = vpop.f32.mrb[5].mxu0 }
 0x1bd   : > { %v785_v3 = vadd.f32 %v784_v1, %v696_v0  ;;  %v1448_v4 = vpop.f32.mrb[5].mxu1  ;;  %v699_v5 = vpop.f32.mrb[6].mxu0 }
 0x1be   : > { %v787_v6 = vpop.f32.mrb[6].mxu1  ;;  %v1429_v7 = vpop.f32.mrb[7].mxu0 }
 0x1bf   : > { %v1449_v9 = vpop.f32.mrb[7].mxu1  ;;  %v794_v11 = vadd.f32 %v1260_v10, %v785_v3 }
 0x1c1   : > { %v1261_v12 = vmul.f32 -1.442695, %v794_v11 }
 0x1c3   : > { %1616 = vpow2.f32 %v1261_v12 }
 0x1c4   : > { %1618 = vrcp.f32 %v577_v14 }
 0x1cd   : > { %v1617_v15 = vpop.eup %1616 }
 0x1ce   : > { %v798_v19 = vadd.f32 1.0, %v1617_v15  ;;  %v1619_v27 = vpop.eup %1618 }
 0x1d0   : > { %1620 = vrcp.f32 %v798_v19 }
 0x1da   : > { %v1621_v33 = vpop.eup %1620 }
 0x1db   : > { %v904_v20 = vpop.f32.mrb[8].mxu0  ;;  %v1022_v34 = vsub.f32 1.0, %v1621_v33  ;;  %v1024_v37 = vmul.f32 %v1621_v33, %v2151_v17 }
 0x1dc   : > { %v1013_v21 = vpop.f32.mrb[8].mxu1  ;;  %v1468_v22 = vpop.f32.mrb[9].mxu0  ;;  %v905_v23 = vadd.f32 %v1278_v16, %v904_v20 }
 0x1dd   : > { %v1014_v24 = vadd.f32 %v1303_v18, %v1013_v21  ;;  %v1488_v25 = vpop.f32.mrb[9].mxu1  ;;  %v907_v26 = vpop.f32.mrb[10].mxu0 }
 0x1de   : > { %v1016_v28 = vpop.f32.mrb[10].mxu1  ;;  %v1469_v29 = vpop.f32.mrb[11].mxu0 }
 0x1df   : > { %v1019_v30 = vmul.f32 %v1619_v27, %v1014_v24  ;;  %v1489_v31 = vpop.f32.mrb[11].mxu1 }
 0x1e1   : > { %v1020_v32 = vadd.f32 %v1019_v30, %v905_v23 }
 0x1e3   : > { %1622 = vtanh.f32 %v1020_v32 }
 0x1ed   : > { %v1623_v35 = vpop.eup %1622 }
 0x1ee   : > { %v1023_v36 = vmul.f32 %v1623_v35, %v1022_v34 }
 0x1f0   : > { %v1025_v38 = vadd.f32 %v1024_v37, %v1023_v36 }
 0x1f2   : > { %1026 = vst [vmem:[%s2113_s28] sm:$0xff] %v1025_v38  ;;  %v1027_v39 = vpack.c.bf16 %v1025_v38, %v1025_v38 }
 0x1f3   : > { %1755 = shalt.err (!%p1752_p4)
}
 0x1f4   : > { %s1756_s14 = scalar_lea.hbm %s2250_s8, 128  ;;  %s1760_s23 = scalar_lea.hbm %s2299_s5, 384 }
 0x1f5   : > { %p1757_p7 = scmp.ne.s32.totalorder %s2250_s8, %s1756_s14  ;;  %p1761_p12 = scmp.lt.u32.totalorder %s2250_s8, %s2299_s5 }
 0x1f6   : > { %p1762_p3 = scmp.lt.u32.totalorder %s1760_s23, %s1756_s14  ;;  %p1764_p13 = scmp.lt.u32.totalorder %s1756_s14, %s2250_s8 }
 0x1f7   : > { %p1758_p1 = pnand %p1757_p7, %p2341_p2 }
 0x1f8   : > { %p1763_p0 = por %p1762_p3, %p1761_p12 }
 0x1f9   : > { %p1759_p11 = pneg %p1758_p1 }
 0x1fa   : > { %p1765_p10 = por %p1764_p13, %p1763_p0 }
 0x1fc   : > { %p1766_p8 = pnand %p1765_p10, %p1759_p11 }
 0x1fe   : > { %1769 = shalt.err (!%p1766_p8)
}
 0x1ff   : > { %1505 = dma.vmem_to_hbm [thread:$0]  (%p2341_p2), %s2252_s11, 128, %s2250_s8, %s1030_s2   ;;  %1028 = vst [vmem:[#allocation2] sm:$0xf] %v1027_v39 }
 0x200 PF: > { %s2342_s1 = sld [smem:[#allocation19_spill]]  ;;  %p1528_p5 = scmp.ge.s32.totalorder %s1816_s21, 2 }
 0x201   : > { %s1055_s16 = sand.u32 1, %s1804_s18  }
 0x202   : > { %s1056_s30 = scalar_lea.sflag [#allocation5], %s1055_s16 }
 0x206   : > { %p2343_p9 = scmp.ne.s32.totalorder %s2342_s1, 0 }
 0x208   : > { %p1522_p6 = pnand %p1528_p5, %p2343_p9 }
 0x20a   : > { %1799 = dma.done.wait (!%p1522_p6), %s1056_s30, 128  }
 0x20b   : > { %1801 = vsyncadd (!%p1522_p6), %s1056_s30, 4294967168  ;;  %s2344_s21 = sld [smem:[#allocation17_spill]]  ;;  %s2345_s29 = sld [smem:[#allocation16_spill]] }
 0x20c   : > { %s2346_s20 = sld [smem:[#allocation18_spill]]  ;;  %s2347_s18 = smov %s1808_s19 }
 0x211   : > { %p22_p4 = scmp.ge.s32.totalorder %s2344_s21, 5   ;;  %s2348_s19 = smov %s2345_s29 }
 0x213   :  { %24 = sbr.rel (!%p22_p4) target bundleno = 11 (0xb), region = 125 }
 0x21a   :  { %1061 = vsyncpa [#allocation4], 1 }
 0x21b   :  { %1063 = vsyncpa [#allocation4 + $0x1], 1 }
 0x21c   :  { %1064 = vsyncpa [#allocation7], 1 }
 0x21d   :  { %1066 = vsyncpa [#allocation7 + $0x1], 1 }
 0x21e   :  { %1067 = vsyncpa [#allocation10], 1 }
 0x21f   :  { %1069 = vsyncpa [#allocation10 + $0x1], 1 }
 0x220   :  { %1070 = vsyncpa [#allocation5], 1 }
 0x221   :  { %1072 = vsyncpa [#allocation5 + $0x1], 1 }

</bundles_post_ra>
